<compile_context>
chip_gen: v6e
topology: v6e:2x2x1
jax: 0.10.0
libtpu: 0.0.40
codegen_flags: <defaults>
</compile_context>

<pallas_src>
import math
import jax
import jax.numpy as jnp
from jax.experimental import pallas as pl
from jax.experimental.pallas import tpu as pltpu  # noqa: F401  (kept for TPU-specific params if scaled up)

# ---- small, BERT-shaped config -------------------------------------------
B, S, H = 2, 8, 32           # batch, seq len, hidden size
BS = B * S                   # all rows handled by a single grid-less program
NUM_HEADS, HEAD_DIM = 2, 16  # H == NUM_HEADS * HEAD_DIM
FFN = 64                     # intermediate size of the encoder FFN
VOCAB = 100
NUM_LABELS = 2
CLS_DIMS = (H, 512, 256, 128, NUM_LABELS)
LN_EPS = 1e-12
LANE = 128                   # TPU lane width: kernel outputs kept lane-dense

# rows of the packed (8, 128) bias / LayerNorm table (one VMEM block instead
# of 10+ separately DMA'd (1,H)/(1,FFN) vectors)
(VEC_BQKV, VEC_BO, VEC_LN1_G, VEC_LN1_B,
 VEC_BF1, VEC_BF2, VEC_LN2_G, VEC_LN2_B) = range(8)


# ---------------------------------------------------------------------------
# One fused kernel: encoder layer + classifier MLP (single program, no grid)
# ---------------------------------------------------------------------------
def bert_senti_kernel(x_ref, mask_ref,
                      wqkv_ref, wo_ref, wf1_ref, wf2_ref, vecs_ref,
                      w1_ref, b1_ref, w2_ref, b2_ref, w3_ref, b3_ref,
                      w4_ref, b4_ref,
                      out_ref):
    x = x_ref[...]                       # (BS, H)   f32
    vecs = vecs_ref[...]                 # (8, 128)  f32 packed bias/LN table
    mask = mask_ref[...]                 # (BS, BS)  f32 block-diagonal batch mask

    # ---- fused QKV projection: one lane-dense (BS, 128) MXU result ---------
    qkv = jnp.dot(x.astype(jnp.bfloat16), wqkv_ref[...],
                  preferred_element_type=jnp.float32)           # (BS, 128)
    qkv = qkv + vecs[VEC_BQKV:VEC_BQKV + 1, :]
    scale = 1.0 / math.sqrt(HEAD_DIM)
    q = qkv[:, 0:H] * scale              # pre-scale q once
    k = qkv[:, H:2 * H]
    v = qkv[:, 2 * H:3 * H]

    # ---- multi-head self-attention over all B*S rows -----------------------
    # Cross-batch attention is removed by the block-diagonal mask, so no
    # per-batch loop / concatenate is needed; Wo is folded per head so head
    # outputs are accumulated directly (no lane concatenate of (., 16) tiles).
    wo = wo_ref[...]                     # (H, H) bf16
    attn = None
    for h in range(NUM_HEADS):           # static unrolled, NUM_HEADS == 2
        lo = h * HEAD_DIM
        qh = q[:, lo:lo + HEAD_DIM]
        kh = k[:, lo:lo + HEAD_DIM]
        vh = v[:, lo:lo + HEAD_DIM]
        s = jnp.dot(qh, kh.T, preferred_element_type=jnp.float32)   # (BS, BS)
        p = jnp.exp(s) * mask            # scores tiny & bounded: skip max-sub
        p = p * pl.reciprocal(jnp.sum(p, axis=-1, keepdims=True), approx=True)
        ho = jnp.dot(p, vh, preferred_element_type=jnp.float32)     # (BS, HEAD_DIM)
        contrib = jnp.dot(ho.astype(jnp.bfloat16), wo[lo:lo + HEAD_DIM, :],
                          preferred_element_type=jnp.float32)       # (BS, H)
        attn = contrib if attn is None else attn + contrib
    attn = attn + vecs[VEC_BO:VEC_BO + 1, 0:H]

    # ---- residual + LayerNorm 1 (f32 elementwise path) ----------------------
    h1 = x + attn
    mu = jnp.mean(h1, axis=-1, keepdims=True)
    var = jnp.mean(jnp.square(h1 - mu), axis=-1, keepdims=True)
    h1 = (h1 - mu) * jax.lax.rsqrt(var + LN_EPS)
    h1 = h1 * vecs[VEC_LN1_G:VEC_LN1_G + 1, 0:H] + vecs[VEC_LN1_B:VEC_LN1_B + 1, 0:H]

    # ---- FFN (GELU) ---------------------------------------------------------
    ff = (jnp.dot(h1.astype(jnp.bfloat16), wf1_ref[...],
                  preferred_element_type=jnp.float32)
          + vecs[VEC_BF1:VEC_BF1 + 1, 0:FFN])
    # TODO(synk): HF BERT uses exact erf GELU; tanh approximation kept for Mosaic lowering safety.
    ff = jax.nn.gelu(ff, approximate=True)
    ff = (jnp.dot(ff.astype(jnp.bfloat16), wf2_ref[...],
                  preferred_element_type=jnp.float32)
          + vecs[VEC_BF2:VEC_BF2 + 1, 0:H])

    # ---- residual + LayerNorm 2 --------------------------------------------
    h2 = h1 + ff
    mu2 = jnp.mean(h2, axis=-1, keepdims=True)
    var2 = jnp.mean(jnp.square(h2 - mu2), axis=-1, keepdims=True)
    h2 = (h2 - mu2) * jax.lax.rsqrt(var2 + LN_EPS)
    h2 = h2 * vecs[VEC_LN2_G:VEC_LN2_G + 1, 0:H] + vecs[VEC_LN2_B:VEC_LN2_B + 1, 0:H]

    # ---- classifier MLP  H -> 512 -> 256 -> 128 -> 2 (padded to 128 lanes) --
    # Running every row through the MLP costs the same MXU time as 2 rows
    # (sublane granularity); the wrapper slices the CLS rows / first 2 lanes.
    c = jnp.dot(h2.astype(jnp.bfloat16), w1_ref[...],
                preferred_element_type=jnp.float32) + b1_ref[...]
    c = jnp.maximum(c, 0.0)              # Dropout(0.01): identity in eval mode
    c = jnp.dot(c.astype(jnp.bfloat16), w2_ref[...],
                preferred_element_type=jnp.float32) + b2_ref[...]
    c = jnp.maximum(c, 0.0)
    c = jnp.dot(c.astype(jnp.bfloat16), w3_ref[...],
                preferred_element_type=jnp.float32) + b3_ref[...]
    c = jnp.maximum(c, 0.0)
    out_ref[...] = (jnp.dot(c.astype(jnp.bfloat16), w4_ref[...],
                            preferred_element_type=jnp.float32) + b4_ref[...])


def _fused_forward(x_rows, mask, enc_params, cls_params):
    # Whole problem fits trivially in VMEM: no grid, full-array blocks,
    # single launch, lane-dense (BS, 128) output.
    return pl.pallas_call(
        bert_senti_kernel,
        out_shape=jax.ShapeDtypeStruct((BS, LANE), jnp.float32),
    )(x_rows, mask, *enc_params, *cls_params)


@jax.jit
def bert_senti_forward(input_ids, tok_emb, pos_emb, enc_params, cls_params):
    # glue: embedding lookup + flatten to (B*S, H) rows in plain JAX
    x = tok_emb[input_ids] + pos_emb[None, :, :]             # (B, S, H)
    x_rows = x.reshape(BS, H)
    # block-diagonal mask: a row may only attend to rows of its own sequence
    blk = jnp.arange(BS) // S
    mask = (blk[:, None] == blk[None, :]).astype(jnp.float32)   # (BS, BS)
    out = _fused_forward(x_rows, mask, enc_params, cls_params)  # (BS, 128)
    # CLS rows (position 0 of each sequence), first NUM_LABELS lanes
    logits = out.reshape(B, S, LANE)[:, 0, :NUM_LABELS]         # (B, 2)
    return logits


# ---------------------------------------------------------------------------
# Parameter construction (deterministic)
# ---------------------------------------------------------------------------
def make_params(key):
    def nrm(k, shape, scale=0.02):
        return scale * jax.random.normal(k, shape, dtype=jnp.float32)

    keys = jax.random.split(key, 16)
    ki = iter(keys)

    tok_emb = nrm(next(ki), (VOCAB, H))
    pos_emb = nrm(next(ki), (S, H))

    # -- encoder weights: bf16 on the MXU (f32 accumulation in-kernel) --------
    wq = nrm(next(ki), (H, H))
    wk = nrm(next(ki), (H, H))
    wv = nrm(next(ki), (H, H))
    wqkv = jnp.zeros((H, LANE), jnp.float32)
    wqkv = wqkv.at[:, :3 * H].set(jnp.concatenate([wq, wk, wv], axis=1))
    wqkv = wqkv.astype(jnp.bfloat16)                  # (H, 128), lane-padded
    wo = nrm(next(ki), (H, H)).astype(jnp.bfloat16)
    wf1 = nrm(next(ki), (H, FFN)).astype(jnp.bfloat16)
    wf2 = nrm(next(ki), (FFN, H)).astype(jnp.bfloat16)

    # -- packed bias / LayerNorm table: one (8, 128) f32 VMEM block -----------
    vecs = jnp.zeros((8, LANE), jnp.float32)
    vecs = vecs.at[VEC_LN1_G, :H].set(1.0)            # LayerNorm gammas = 1
    vecs = vecs.at[VEC_LN2_G, :H].set(1.0)
    # bias rows (b_qkv, bo, bf1, bf2) and LN betas stay zero

    enc_params = (wqkv, wo, wf1, wf2, vecs)

    # -- classifier MLP; final layer zero-padded to the 128-lane width --------
    cls_params = []
    for i in range(len(CLS_DIMS) - 1):
        fan_in, fan_out = CLS_DIMS[i], CLS_DIMS[i + 1]
        w = nrm(next(ki), (fan_in, fan_out), scale=1.0 / math.sqrt(fan_in))
        b = jnp.zeros((1, fan_out), jnp.float32)
        if fan_out < LANE:                            # keep stores lane-dense
            w = jnp.pad(w, ((0, 0), (0, LANE - fan_out)))
            b = jnp.pad(b, ((0, 0), (0, LANE - fan_out)))
        cls_params += [w.astype(jnp.bfloat16), b]

    return tok_emb, pos_emb, enc_params, tuple(cls_params)


if __name__ == "__main__":
    key = jax.random.PRNGKey(0)
    k_param, k_ids = jax.random.split(key)

    tok_emb, pos_emb, enc_params, cls_params = make_params(k_param)
    input_ids = jax.random.randint(k_ids, (B, S), 0, VOCAB)

    logits = bert_senti_forward(input_ids, tok_emb, pos_emb, enc_params, cls_params)
    jax.block_until_ready(logits)
    assert logits.shape == (B, NUM_LABELS) and logits.dtype == jnp.float32
    print("KERNEL_OK")
</pallas_src>

<mosaic_0001>
module attributes {stable_mosaic.version = 11 : i64} {
  func.func @bert_senti_kernel(%arg0: memref<16x32xf32, #tpu.memory_space<vmem>>, %arg1: memref<16x16xf32, #tpu.memory_space<vmem>>, %arg2: memref<32x128xbf16, #tpu.memory_space<vmem>>, %arg3: memref<32x32xbf16, #tpu.memory_space<vmem>>, %arg4: memref<32x64xbf16, #tpu.memory_space<vmem>>, %arg5: memref<64x32xbf16, #tpu.memory_space<vmem>>, %arg6: memref<8x128xf32, #tpu.memory_space<vmem>>, %arg7: memref<32x512xbf16, #tpu.memory_space<vmem>>, %arg8: memref<1x512xf32, #tpu.memory_space<vmem>>, %arg9: memref<512x256xbf16, #tpu.memory_space<vmem>>, %arg10: memref<1x256xf32, #tpu.memory_space<vmem>>, %arg11: memref<256x128xbf16, #tpu.memory_space<vmem>>, %arg12: memref<1x128xf32, #tpu.memory_space<vmem>>, %arg13: memref<128x128xbf16, #tpu.memory_space<vmem>>, %arg14: memref<1x128xf32, #tpu.memory_space<vmem>>, %arg15: memref<16x128xf32, #tpu.memory_space<vmem>>) attributes {dimension_semantics = [], scalar_prefetch = 0 : i64, scratch_operands = 0 : i64, tpu.core_type = #tpu.core_type<tc>} {
    %c0 = arith.constant 0 : index
    %c0_0 = arith.constant 0 : index
    %0 = vector.load %arg0[%c0, %c0_0] : memref<16x32xf32, #tpu.memory_space<vmem>>, vector<16x32xf32>
    %c0_1 = arith.constant 0 : index
    %c0_2 = arith.constant 0 : index
    %1 = vector.load %arg6[%c0_1, %c0_2] : memref<8x128xf32, #tpu.memory_space<vmem>>, vector<8x128xf32>
    %c0_3 = arith.constant 0 : index
    %c0_4 = arith.constant 0 : index
    %2 = vector.load %arg1[%c0_3, %c0_4] : memref<16x16xf32, #tpu.memory_space<vmem>>, vector<16x16xf32>
    %3 = arith.truncf %0 : vector<16x32xf32> to vector<16x32xbf16>
    %c0_5 = arith.constant 0 : index
    %c0_6 = arith.constant 0 : index
    %4 = vector.load %arg2[%c0_5, %c0_6] : memref<32x128xbf16, #tpu.memory_space<vmem>>, vector<32x128xbf16>
    %cst = arith.constant dense<0.000000e+00> : vector<16x128xf32>
    %5 = tpu.matmul %3, %4, %cst {dimension_numbers = #tpu.dot_dimension_numbers<[1], [0], [0], [1], [0, 0, 1, 1], [], []>} : vector<16x32xbf16>, vector<32x128xbf16>, vector<16x128xf32> -> vector<16x128xf32>
    %6 = vector.extract_strided_slice %1 {offsets = [0, 0], sizes = [1, 128], strides = [1, 1]} : vector<8x128xf32> to vector<1x128xf32>
    %7 = vector.broadcast %6 : vector<1x128xf32> to vector<16x128xf32>
    %8 = arith.addf %5, %7 : vector<16x128xf32>
    %9 = vector.extract_strided_slice %8 {offsets = [0, 0], sizes = [16, 32], strides = [1, 1]} : vector<16x128xf32> to vector<16x32xf32>
    %cst_7 = arith.constant 2.500000e-01 : f32
    %10 = vector.broadcast %cst_7 : f32 to vector<16x32xf32>
    %11 = arith.mulf %9, %10 : vector<16x32xf32>
    %12 = vector.extract_strided_slice %8 {offsets = [0, 32], sizes = [16, 32], strides = [1, 1]} : vector<16x128xf32> to vector<16x32xf32>
    %13 = vector.extract_strided_slice %8 {offsets = [0, 64], sizes = [16, 32], strides = [1, 1]} : vector<16x128xf32> to vector<16x32xf32>
    %c0_8 = arith.constant 0 : index
    %c0_9 = arith.constant 0 : index
    %14 = vector.load %arg3[%c0_8, %c0_9] : memref<32x32xbf16, #tpu.memory_space<vmem>>, vector<32x32xbf16>
    %15 = vector.extract_strided_slice %11 {offsets = [0, 0], sizes = [16, 16], strides = [1, 1]} : vector<16x32xf32> to vector<16x16xf32>
    %16 = vector.extract_strided_slice %12 {offsets = [0, 0], sizes = [16, 16], strides = [1, 1]} : vector<16x32xf32> to vector<16x16xf32>
    %17 = vector.extract_strided_slice %13 {offsets = [0, 0], sizes = [16, 16], strides = [1, 1]} : vector<16x32xf32> to vector<16x16xf32>
    %18 = tpu.transpose %16, [1, 0] : vector<16x16xf32> -> vector<16x16xf32>
    %cst_10 = arith.constant dense<0.000000e+00> : vector<16x16xf32>
    %19 = tpu.matmul %15, %18, %cst_10 {dimension_numbers = #tpu.dot_dimension_numbers<[1], [0], [0], [1], [0, 0, 1, 1], [], []>} : vector<16x16xf32>, vector<16x16xf32>, vector<16x16xf32> -> vector<16x16xf32>
    %20 = math.exp %19 : vector<16x16xf32>
    %21 = arith.mulf %20, %2 : vector<16x16xf32>
    %cst_11 = arith.constant dense<0.000000e+00> : vector<16xf32>
    %22 = vector.multi_reduction <add>, %21, %cst_11 [1] : vector<16x16xf32> to vector<16xf32>
    %23 = vector.shape_cast %22 : vector<16xf32> to vector<16x1xf32>
    %24 = tpu.reciprocal %23 {approx = true} : vector<16x1xf32> -> vector<16x1xf32>
    %25 = vector.broadcast %24 : vector<16x1xf32> to vector<16x16xf32>
    %26 = arith.mulf %21, %25 : vector<16x16xf32>
    %cst_12 = arith.constant dense<0.000000e+00> : vector<16x16xf32>
    %27 = tpu.matmul %26, %17, %cst_12 {dimension_numbers = #tpu.dot_dimension_numbers<[1], [0], [0], [1], [0, 0, 1, 1], [], []>} : vector<16x16xf32>, vector<16x16xf32>, vector<16x16xf32> -> vector<16x16xf32>
    %28 = arith.truncf %27 : vector<16x16xf32> to vector<16x16xbf16>
    %29 = vector.extract_strided_slice %14 {offsets = [0, 0], sizes = [16, 32], strides = [1, 1]} : vector<32x32xbf16> to vector<16x32xbf16>
    %cst_13 = arith.constant dense<0.000000e+00> : vector<16x32xf32>
    %30 = tpu.matmul %28, %29, %cst_13 {dimension_numbers = #tpu.dot_dimension_numbers<[1], [0], [0], [1], [0, 0, 1, 1], [], []>} : vector<16x16xbf16>, vector<16x32xbf16>, vector<16x32xf32> -> vector<16x32xf32>
    %31 = vector.extract_strided_slice %11 {offsets = [0, 16], sizes = [16, 16], strides = [1, 1]} : vector<16x32xf32> to vector<16x16xf32>
    %32 = vector.extract_strided_slice %12 {offsets = [0, 16], sizes = [16, 16], strides = [1, 1]} : vector<16x32xf32> to vector<16x16xf32>
    %33 = vector.extract_strided_slice %13 {offsets = [0, 16], sizes = [16, 16], strides = [1, 1]} : vector<16x32xf32> to vector<16x16xf32>
    %34 = tpu.transpose %32, [1, 0] : vector<16x16xf32> -> vector<16x16xf32>
    %cst_14 = arith.constant dense<0.000000e+00> : vector<16x16xf32>
    %35 = tpu.matmul %31, %34, %cst_14 {dimension_numbers = #tpu.dot_dimension_numbers<[1], [0], [0], [1], [0, 0, 1, 1], [], []>} : vector<16x16xf32>, vector<16x16xf32>, vector<16x16xf32> -> vector<16x16xf32>
    %36 = math.exp %35 : vector<16x16xf32>
    %37 = arith.mulf %36, %2 : vector<16x16xf32>
    %cst_15 = arith.constant dense<0.000000e+00> : vector<16xf32>
    %38 = vector.multi_reduction <add>, %37, %cst_15 [1] : vector<16x16xf32> to vector<16xf32>
    %39 = vector.shape_cast %38 : vector<16xf32> to vector<16x1xf32>
    %40 = tpu.reciprocal %39 {approx = true} : vector<16x1xf32> -> vector<16x1xf32>
    %41 = vector.broadcast %40 : vector<16x1xf32> to vector<16x16xf32>
    %42 = arith.mulf %37, %41 : vector<16x16xf32>
    %cst_16 = arith.constant dense<0.000000e+00> : vector<16x16xf32>
    %43 = tpu.matmul %42, %33, %cst_16 {dimension_numbers = #tpu.dot_dimension_numbers<[1], [0], [0], [1], [0, 0, 1, 1], [], []>} : vector<16x16xf32>, vector<16x16xf32>, vector<16x16xf32> -> vector<16x16xf32>
    %44 = arith.truncf %43 : vector<16x16xf32> to vector<16x16xbf16>
    %45 = vector.extract_strided_slice %14 {offsets = [16, 0], sizes = [16, 32], strides = [1, 1]} : vector<32x32xbf16> to vector<16x32xbf16>
    %cst_17 = arith.constant dense<0.000000e+00> : vector<16x32xf32>
    %46 = tpu.matmul %44, %45, %cst_17 {dimension_numbers = #tpu.dot_dimension_numbers<[1], [0], [0], [1], [0, 0, 1, 1], [], []>} : vector<16x16xbf16>, vector<16x32xbf16>, vector<16x32xf32> -> vector<16x32xf32>
    %47 = arith.addf %30, %46 : vector<16x32xf32>
    %48 = vector.extract_strided_slice %1 {offsets = [1, 0], sizes = [1, 32], strides = [1, 1]} : vector<8x128xf32> to vector<1x32xf32>
    %49 = vector.broadcast %48 : vector<1x32xf32> to vector<16x32xf32>
    %50 = arith.addf %47, %49 : vector<16x32xf32>
    %51 = arith.addf %0, %50 : vector<16x32xf32>
    %cst_18 = arith.constant dense<0.000000e+00> : vector<16xf32>
    %52 = vector.multi_reduction <add>, %51, %cst_18 [1] : vector<16x32xf32> to vector<16xf32>
    %53 = vector.shape_cast %52 : vector<16xf32> to vector<16x1xf32>
    %cst_19 = arith.constant 3.200000e+01 : f32
    %54 = vector.broadcast %cst_19 : f32 to vector<16x1xf32>
    %55 = arith.divf %53, %54 : vector<16x1xf32>
    %56 = vector.broadcast %55 : vector<16x1xf32> to vector<16x32xf32>
    %57 = arith.subf %51, %56 : vector<16x32xf32>
    %58 = arith.mulf %57, %57 : vector<16x32xf32>
    %cst_20 = arith.constant dense<0.000000e+00> : vector<16xf32>
    %59 = vector.multi_reduction <add>, %58, %cst_20 [1] : vector<16x32xf32> to vector<16xf32>
    %60 = vector.shape_cast %59 : vector<16xf32> to vector<16x1xf32>
    %cst_21 = arith.constant 3.200000e+01 : f32
    %61 = vector.broadcast %cst_21 : f32 to vector<16x1xf32>
    %62 = arith.divf %60, %61 : vector<16x1xf32>
    %63 = vector.broadcast %55 : vector<16x1xf32> to vector<16x32xf32>
    %64 = arith.subf %51, %63 : vector<16x32xf32>
    %cst_22 = arith.constant 9.99999996E-13 : f32
    %65 = vector.broadcast %cst_22 : f32 to vector<16x1xf32>
    %66 = arith.addf %62, %65 : vector<16x1xf32>
    %67 = math.rsqrt %66 : vector<16x1xf32>
    %68 = vector.broadcast %67 : vector<16x1xf32> to vector<16x32xf32>
    %69 = arith.mulf %64, %68 : vector<16x32xf32>
    %70 = vector.extract_strided_slice %1 {offsets = [2, 0], sizes = [1, 32], strides = [1, 1]} : vector<8x128xf32> to vector<1x32xf32>
    %71 = vector.broadcast %70 : vector<1x32xf32> to vector<16x32xf32>
    %72 = arith.mulf %69, %71 : vector<16x32xf32>
    %73 = vector.extract_strided_slice %1 {offsets = [3, 0], sizes = [1, 32], strides = [1, 1]} : vector<8x128xf32> to vector<1x32xf32>
    %74 = vector.broadcast %73 : vector<1x32xf32> to vector<16x32xf32>
    %75 = arith.addf %72, %74 : vector<16x32xf32>
    %76 = arith.truncf %75 : vector<16x32xf32> to vector<16x32xbf16>
    %c0_23 = arith.constant 0 : index
    %c0_24 = arith.constant 0 : index
    %77 = vector.load %arg4[%c0_23, %c0_24] : memref<32x64xbf16, #tpu.memory_space<vmem>>, vector<32x64xbf16>
    %cst_25 = arith.constant dense<0.000000e+00> : vector<16x64xf32>
    %78 = tpu.matmul %76, %77, %cst_25 {dimension_numbers = #tpu.dot_dimension_numbers<[1], [0], [0], [1], [0, 0, 1, 1], [], []>} : vector<16x32xbf16>, vector<32x64xbf16>, vector<16x64xf32> -> vector<16x64xf32>
    %79 = vector.extract_strided_slice %1 {offsets = [4, 0], sizes = [1, 64], strides = [1, 1]} : vector<8x128xf32> to vector<1x64xf32>
    %80 = vector.broadcast %79 : vector<1x64xf32> to vector<16x64xf32>
    %81 = arith.addf %78, %80 : vector<16x64xf32>
    %82 = arith.mulf %81, %81 : vector<16x64xf32>
    %83 = arith.mulf %81, %82 : vector<16x64xf32>
    %cst_26 = arith.constant 4.471500e-02 : f32
    %84 = vector.broadcast %cst_26 : f32 to vector<16x64xf32>
    %85 = arith.mulf %84, %83 : vector<16x64xf32>
    %86 = arith.addf %81, %85 : vector<16x64xf32>
    %cst_27 = arith.constant 0.797884583 : f32
    %87 = vector.broadcast %cst_27 : f32 to vector<16x64xf32>
    %88 = arith.mulf %87, %86 : vector<16x64xf32>
    %89 = math.tanh %88 : vector<16x64xf32>
    %cst_28 = arith.constant 1.000000e+00 : f32
    %90 = vector.broadcast %cst_28 : f32 to vector<16x64xf32>
    %91 = arith.addf %90, %89 : vector<16x64xf32>
    %cst_29 = arith.constant 5.000000e-01 : f32
    %92 = vector.broadcast %cst_29 : f32 to vector<16x64xf32>
    %93 = arith.mulf %92, %91 : vector<16x64xf32>
    %94 = arith.mulf %81, %93 : vector<16x64xf32>
    %95 = arith.truncf %94 : vector<16x64xf32> to vector<16x64xbf16>
    %c0_30 = arith.constant 0 : index
    %c0_31 = arith.constant 0 : index
    %96 = vector.load %arg5[%c0_30, %c0_31] : memref<64x32xbf16, #tpu.memory_space<vmem>>, vector<64x32xbf16>
    %cst_32 = arith.constant dense<0.000000e+00> : vector<16x32xf32>
    %97 = tpu.matmul %95, %96, %cst_32 {dimension_numbers = #tpu.dot_dimension_numbers<[1], [0], [0], [1], [0, 0, 1, 1], [], []>} : vector<16x64xbf16>, vector<64x32xbf16>, vector<16x32xf32> -> vector<16x32xf32>
    %98 = vector.extract_strided_slice %1 {offsets = [5, 0], sizes = [1, 32], strides = [1, 1]} : vector<8x128xf32> to vector<1x32xf32>
    %99 = vector.broadcast %98 : vector<1x32xf32> to vector<16x32xf32>
    %100 = arith.addf %97, %99 : vector<16x32xf32>
    %101 = arith.addf %75, %100 : vector<16x32xf32>
    %cst_33 = arith.constant dense<0.000000e+00> : vector<16xf32>
    %102 = vector.multi_reduction <add>, %101, %cst_33 [1] : vector<16x32xf32> to vector<16xf32>
    %103 = vector.shape_cast %102 : vector<16xf32> to vector<16x1xf32>
    %cst_34 = arith.constant 3.200000e+01 : f32
    %104 = vector.broadcast %cst_34 : f32 to vector<16x1xf32>
    %105 = arith.divf %103, %104 : vector<16x1xf32>
    %106 = vector.broadcast %105 : vector<16x1xf32> to vector<16x32xf32>
    %107 = arith.subf %101, %106 : vector<16x32xf32>
    %108 = arith.mulf %107, %107 : vector<16x32xf32>
    %cst_35 = arith.constant dense<0.000000e+00> : vector<16xf32>
    %109 = vector.multi_reduction <add>, %108, %cst_35 [1] : vector<16x32xf32> to vector<16xf32>
    %110 = vector.shape_cast %109 : vector<16xf32> to vector<16x1xf32>
    %cst_36 = arith.constant 3.200000e+01 : f32
    %111 = vector.broadcast %cst_36 : f32 to vector<16x1xf32>
    %112 = arith.divf %110, %111 : vector<16x1xf32>
    %113 = vector.broadcast %105 : vector<16x1xf32> to vector<16x32xf32>
    %114 = arith.subf %101, %113 : vector<16x32xf32>
    %cst_37 = arith.constant 9.99999996E-13 : f32
    %115 = vector.broadcast %cst_37 : f32 to vector<16x1xf32>
    %116 = arith.addf %112, %115 : vector<16x1xf32>
    %117 = math.rsqrt %116 : vector<16x1xf32>
    %118 = vector.broadcast %117 : vector<16x1xf32> to vector<16x32xf32>
    %119 = arith.mulf %114, %118 : vector<16x32xf32>
    %120 = vector.extract_strided_slice %1 {offsets = [6, 0], sizes = [1, 32], strides = [1, 1]} : vector<8x128xf32> to vector<1x32xf32>
    %121 = vector.broadcast %120 : vector<1x32xf32> to vector<16x32xf32>
    %122 = arith.mulf %119, %121 : vector<16x32xf32>
    %123 = vector.extract_strided_slice %1 {offsets = [7, 0], sizes = [1, 32], strides = [1, 1]} : vector<8x128xf32> to vector<1x32xf32>
    %124 = vector.broadcast %123 : vector<1x32xf32> to vector<16x32xf32>
    %125 = arith.addf %122, %124 : vector<16x32xf32>
    %126 = arith.truncf %125 : vector<16x32xf32> to vector<16x32xbf16>
    %c0_38 = arith.constant 0 : index
    %c0_39 = arith.constant 0 : index
    %127 = vector.load %arg7[%c0_38, %c0_39] : memref<32x512xbf16, #tpu.memory_space<vmem>>, vector<32x512xbf16>
    %cst_40 = arith.constant dense<0.000000e+00> : vector<16x512xf32>
    %128 = tpu.matmul %126, %127, %cst_40 {dimension_numbers = #tpu.dot_dimension_numbers<[1], [0], [0], [1], [0, 0, 1, 1], [], []>} : vector<16x32xbf16>, vector<32x512xbf16>, vector<16x512xf32> -> vector<16x512xf32>
    %c0_41 = arith.constant 0 : index
    %c0_42 = arith.constant 0 : index
    %129 = vector.load %arg8[%c0_41, %c0_42] : memref<1x512xf32, #tpu.memory_space<vmem>>, vector<1x512xf32>
    %130 = vector.broadcast %129 : vector<1x512xf32> to vector<16x512xf32>
    %131 = arith.addf %128, %130 : vector<16x512xf32>
    %cst_43 = arith.constant 0.000000e+00 : f32
    %132 = vector.broadcast %cst_43 : f32 to vector<16x512xf32>
    %133 = arith.maximumf %131, %132 : vector<16x512xf32>
    %134 = arith.truncf %133 : vector<16x512xf32> to vector<16x512xbf16>
    %c0_44 = arith.constant 0 : index
    %c0_45 = arith.constant 0 : index
    %135 = vector.load %arg9[%c0_44, %c0_45] : memref<512x256xbf16, #tpu.memory_space<vmem>>, vector<512x256xbf16>
    %cst_46 = arith.constant dense<0.000000e+00> : vector<16x256xf32>
    %136 = tpu.matmul %134, %135, %cst_46 {dimension_numbers = #tpu.dot_dimension_numbers<[1], [0], [0], [1], [0, 0, 1, 1], [], []>} : vector<16x512xbf16>, vector<512x256xbf16>, vector<16x256xf32> -> vector<16x256xf32>
    %c0_47 = arith.constant 0 : index
    %c0_48 = arith.constant 0 : index
    %137 = vector.load %arg10[%c0_47, %c0_48] : memref<1x256xf32, #tpu.memory_space<vmem>>, vector<1x256xf32>
    %138 = vector.broadcast %137 : vector<1x256xf32> to vector<16x256xf32>
    %139 = arith.addf %136, %138 : vector<16x256xf32>
    %cst_49 = arith.constant 0.000000e+00 : f32
    %140 = vector.broadcast %cst_49 : f32 to vector<16x256xf32>
    %141 = arith.maximumf %139, %140 : vector<16x256xf32>
    %142 = arith.truncf %141 : vector<16x256xf32> to vector<16x256xbf16>
    %c0_50 = arith.constant 0 : index
    %c0_51 = arith.constant 0 : index
    %143 = vector.load %arg11[%c0_50, %c0_51] : memref<256x128xbf16, #tpu.memory_space<vmem>>, vector<256x128xbf16>
    %cst_52 = arith.constant dense<0.000000e+00> : vector<16x128xf32>
    %144 = tpu.matmul %142, %143, %cst_52 {dimension_numbers = #tpu.dot_dimension_numbers<[1], [0], [0], [1], [0, 0, 1, 1], [], []>} : vector<16x256xbf16>, vector<256x128xbf16>, vector<16x128xf32> -> vector<16x128xf32>
    %c0_53 = arith.constant 0 : index
    %c0_54 = arith.constant 0 : index
    %145 = vector.load %arg12[%c0_53, %c0_54] : memref<1x128xf32, #tpu.memory_space<vmem>>, vector<1x128xf32>
    %146 = vector.broadcast %145 : vector<1x128xf32> to vector<16x128xf32>
    %147 = arith.addf %144, %146 : vector<16x128xf32>
    %cst_55 = arith.constant 0.000000e+00 : f32
    %148 = vector.broadcast %cst_55 : f32 to vector<16x128xf32>
    %149 = arith.maximumf %147, %148 : vector<16x128xf32>
    %150 = arith.truncf %149 : vector<16x128xf32> to vector<16x128xbf16>
    %c0_56 = arith.constant 0 : index
    %c0_57 = arith.constant 0 : index
    %151 = vector.load %arg13[%c0_56, %c0_57] : memref<128x128xbf16, #tpu.memory_space<vmem>>, vector<128x128xbf16>
    %cst_58 = arith.constant dense<0.000000e+00> : vector<16x128xf32>
    %152 = tpu.matmul %150, %151, %cst_58 {dimension_numbers = #tpu.dot_dimension_numbers<[1], [0], [0], [1], [0, 0, 1, 1], [], []>} : vector<16x128xbf16>, vector<128x128xbf16>, vector<16x128xf32> -> vector<16x128xf32>
    %c0_59 = arith.constant 0 : index
    %c0_60 = arith.constant 0 : index
    %153 = vector.load %arg14[%c0_59, %c0_60] : memref<1x128xf32, #tpu.memory_space<vmem>>, vector<1x128xf32>
    %154 = vector.broadcast %153 : vector<1x128xf32> to vector<16x128xf32>
    %155 = arith.addf %152, %154 : vector<16x128xf32>
    %c0_61 = arith.constant 0 : index
    %c0_62 = arith.constant 0 : index
    %156 = vector.load %arg15[%c0_61, %c0_62] : memref<16x128xf32, #tpu.memory_space<vmem>>, vector<16x128xf32>
    tpu.vector_store %arg15[%c0_61, %c0_62], %155 {strides = array<i32>} : memref<16x128xf32, #tpu.memory_space<vmem>>, vector<16x128xf32>,
    return
  }
}

</mosaic_0001>

<bundles_post_ra>
// kernel: bert_senti_forward.1
= control target key start
LH: loop header
LB: loop body
LE: loop exit
PB: predicated region body
PF: predicated region fallthrough
CT: control target
= control target key end

     0   :  { %20 = vsyncpa [#allocation3], 0  ;;  %s2323_s18 = smov [#allocation2]   ;;  %s2714_s0 = inlined_call_operand.vmem [shape: f32[16,32], index: 0, kind: input, shape index: {}]   ;;  %s2715_s1 = inlined_call_operand.vmem [shape: f32[16,16], index: 1, kind: input, shape index: {}]   ;;  %s2716_s2 = inlined_call_operand.vmem [shape: bf16[32,128], index: 2, kind: input, shape index: {}]   ;;  %s2717_s3 = inlined_call_operand.vmem [shape: bf16[32,32], index: 3, kind: input, shape index: {}]   ;;  %s2718_s4 = inlined_call_operand.vmem [shape: bf16[32,64], index: 4, kind: input, shape index: {}]   ;;  %s2719_s5 = inlined_call_operand.vmem [shape: bf16[64,32], index: 5, kind: input, shape index: {}]   ;;  %s2720_s6 = inlined_call_operand.vmem [shape: f32[8,128], index: 6, kind: input, shape index: {}]   ;;  %s2721_s7 = inlined_call_operand.vmem [shape: bf16[32,512], index: 7, kind: input, shape index: {}]   ;;  %s2722_s8 = inlined_call_operand.vmem [shape: f32[1,512], index: 8, kind: input, shape index: {}]   ;;  %s2723_s9 = inlined_call_operand.hbm [shape: bf16[512,256], index: 9, kind: input, shape index: {}]   ;;  %s2724_s10 = inlined_call_operand.vmem [shape: f32[1,256], index: 10, kind: input, shape index: {}]   ;;  %s2725_s11 = inlined_call_operand.vmem [shape: bf16[256,128], index: 11, kind: input, shape index: {}]   ;;  %s2726_s12 = inlined_call_operand.vmem [shape: f32[1,128], index: 12, kind: input, shape index: {}]   ;;  %s2727_s13 = inlined_call_operand.vmem [shape: bf16[128,128], index: 13, kind: input, shape index: {}]   ;;  %s2728_s14 = inlined_call_operand.vmem [shape: f32[1,128], index: 14, kind: input, shape index: {}]   ;;  %s2729_s15 = inlined_call_operand.vmem [shape: f32[16,128], index: 15, kind: output, shape index: {}]  }
   0x1   :  { %s44_s19 = sshll.u32 %s2323_s18, 4  ;;  %s45_s19 = int_to_ptr.vmem [resolvable:$true] %s44_s19 }
   0x2   :  { %s2309_s20 = scalar_lea.vmem %s45_s19, 8192  ;;  %p2314_p1 = scmp.lt.s32.totalorder %s45_s19, %s45_s19 }
   0x3   :  { %p2310_p0 = scmp.ne.s32.totalorder %s45_s19, %s2309_s20  ;;  %p2315_p2 = scmp.lt.s32.totalorder %s2309_s20, %s2309_s20 }
   0x5   :  { %p2316_p3 = por %p2315_p2, %p2314_p1 }
   0x7   :  { %p2317_p4 = pnand %p2316_p3, %p2310_p0 }
   0x9   :  { %2320 = shalt.err (!%p2317_p4)
}
   0xa   :  { %s2324_s21 = smov 128   ;;  %s2325_s22 = smov 8  }
   0xb   :  { %50 = dma.hbm_to_vmem [thread:$0]  %s2723_s9, 8192, %s45_s19, [#allocation3], %s2324_s21, %s2324_s21, %s2325_s22  }
   0xc   :  { %2321 = dma.done.wait [#allocation3], 8192  }
   0xd   :  { %2322 = vsyncadd [#allocation3], 4294959104  ;;  %v2326_v0 = vmov 0.0   ;;  %vm2327_vm0 = vmmov 0   ;;  %v2131_v1 = vld [vmem:[%s2716_s2 + $0x8] sm:$0xff]   ;;  %v2132_v2 = vld [vmem:[%s2716_s2] sm:$0xff]   ;;  %v75_v6 = vlaneseq }
   0xe   :  { %2032 = vmatprep.subr.bf16.mxu0 %v2326_v0  ;;  %2036 = vmatprep.mubr.msk.bf16.mxu0 %vm2327_vm0, %v2326_v0  ;;  %v2429_v3 = vld [vmem:[%s2714_s0] sm:$0xff]  ;;  %v2434_v4 = vld [vmem:[%s2714_s0 + $0x8] sm:$0xff]  ;;  %vm91_vm1 = vcmask 261120   ;;  %vm148_vm2 = vcmask 130048   ;;  %s2328_s0 = smov 80   ;;  %s2330_s18 = smov 112  }
   0xf   :  { %2033 = vmatpush3.bf16.msra.mxu0 %v2131_v1  ;;  %v70_v5 = vpack.c.bf16 %v2434_v4, %v2429_v3  ;;  %v2440_v7 = vshrl.u32 %v75_v6, 7  ;;  %v2448_v9 = vld [vmem:[%s2720_s6] sm:$0xff]  ;;  %s2329_s6 = smov 96   ;;  %s2331_s19 = smov 64   ;;  %v69_v34 = vld [vmem:[%s2715_s1 + $0x8] sm:$0xff]  ;;  %vm800_vm3 = vcmask 523264  }
  0x10   :  { %2034 = vmatprep.subr.bf16.mxu0 %v2326_v0  ;;  %v68_v38 = vld [vmem:[%s2715_s1] sm:$0xff]  ;;  %s2332_s24 = smov 48   ;;  %v2134_v1 = vld [vmem:[%s2717_s3 + $0x8] sm:$0xff]  }
  0x11   :  { %v2443_v8 = vsub.s32 0, %v2440_v7  ;;  %v2133_v63 = vld [vmem:[%s2717_s3] sm:$0xff]  }
  0x13   :  { %2035 = vmatpush3.bf16.msra.mxu0 %v2132_v2  ;;  %v78_v10 = vrot.slane %v2448_v9, %v2443_v8 }
  0x16   :  { %2037 = vmatmul.mubr.msk.bf16.vlgmr.msra.gmra.mxu0 %vm91_vm1, %v70_v5 }
  0xd6   :  { %v129_v11 = vpop.f32.mrf.mxu0 }
  0xd7   :  { %v2452_v12 = vadd.f32 %v129_v11, %v78_v10 }
  0xd8   :  { %v2038_v13 = vpop.f32.mrf.mxu0 }
  0xd9   :  { %v136_v14 = vmul.f32 0.25, %v2452_v12  ;;  %v2515_v13 = vsub.s32 1, %v2440_v7 }
  0xda   :  { %v132_v15 = vpop.f32.mrf.mxu0 }
  0xdb   :  { %v2455_v16 = vadd.f32 %v132_v15, %v78_v10  ;;  %2044 = vmatprep.mubr.msk.f32.mxu1 %vm148_vm2, %v136_v14 }
  0xdc   :  { %v2039_v17 = vpop.f32.mrf.mxu0 }
  0xdd   :  { %344 = vrot.lane.b32.xlu1 %v2455_v16, %s2328_s0  ;;  %146 = vrot.lane.b32.xlu0 %v2455_v16, %s2329_s6  ;;  %v137_v18 = vmul.f32 0.25, %v2455_v16 }
  0xe1   :  { %342 = vrot.lane.b32.xlu1 %v2452_v12, %s2328_s0  ;;  %144 = vrot.lane.b32.xlu0 %v2452_v12, %s2329_s6 }
  0xe5   :  { %338 = vrot.lane.b32.xlu0 %v136_v14, %s2330_s18  ;;  %340 = vrot.lane.b32.xlu1 %v137_v18, %s2330_s18 }
  0xe9   :  { %252 = vrot.lane.b32.xlu1 %v2455_v16, %s2331_s19 }
 0x14f   :  { %v345_v19 = vpop.permute.xlu1 %344  ;;  %v147_v20 = vpop.permute.xlu0 %146 }
 0x150   :  { %2040 = vmatprep.subr.msk.mxu1 %vm148_vm2, %v147_v20  ;;  %2054 = vmatprep.subr.msk.mxu0 %vm148_vm2, %v345_v19 }
 0x151   :  { %2041 = vmatpush3.xpose.msk.msra.mxu1 %vm148_vm2, %v147_v20  ;;  %2055 = vmatpush3.xpose.msk.msra.mxu0 %vm148_vm2, %v345_v19 }
 0x153   :  { %v343_v21 = vpop.permute.xlu1 %342  ;;  %v145_v22 = vpop.permute.xlu0 %144 }
 0x154   :  { %2042 = vmatprep.subr.msk.mxu1 %vm148_vm2, %v145_v22  ;;  %2056 = vmatprep.subr.msk.mxu0 %vm148_vm2, %v343_v21 }
 0x155   :  { %2043 = vmatpush3.xpose.msk.msra.mxu1 %vm148_vm2, %v145_v22  ;;  %2057 = vmatpush3.xpose.msk.msra.mxu0 %vm148_vm2, %v343_v21 }
 0x156   :  { %2068 = vmatprep.subr.bf16.mxu0 %v2326_v0 }
 0x157   :  { %v339_v23 = vpop.permute.xlu0 %338  ;;  %v341_v24 = vpop.permute.xlu1 %340 }
 0x158   :  { %2045 = vmatmul.mubr.msk.f32.vlgmr.msra.gmra.mxu1 %vm148_vm2, %v137_v18  ;;  %2058 = vmatprep.mubr.msk.f32.mxu0 %vm148_vm2, %v339_v23 }
 0x159   :  { %2059 = vmatmul.mubr.msk.f32.vlgmr.msra.gmra.mxu0 %vm148_vm2, %v341_v24 }
 0x15a   :  { %2070 = vmatprep.mubr.msk.bf16.mxu0 %vm2327_vm0, %v2326_v0  ;;  %2069 = vmatpush3.bf16.msra.mxu0 %v2134_v1  ;;  %v687_v1 = vsub.s32 4, %v2440_v7 }
 0x15b   :  { %v253_v25 = vpop.permute.xlu1 %252  ;;  %2080 = vmatprep.subr.bf16.mxu0 %v2326_v0 }
 0x15c   :  { %2047 = vmatprep.subr.mxu1 %v253_v25 }
 0x15d   :  { %2048 = vmatpush3.msra.mxu1 %v253_v25 }
 0x218   :  { %v2046_v26 = vpop.f32.mrf.mxu1 }
 0x219   :  { %v236_v27 = vmul.f32 1.442695, %v2046_v26  ;;  %v2060_v28 = vpop.f32.mrf.mxu0 }
 0x21a   :  { %v431_v29 = vmul.f32 1.442695, %v2060_v28  ;;  %v225_v30 = vpop.f32.mrf.mxu1 }
 0x21b   :  { %2273 = vpow2.f32 %v236_v27  ;;  %v234_v31 = vmul.f32 1.442695, %v225_v30  ;;  %v420_v32 = vpop.f32.mrf.mxu0 }
 0x21c   :  { %2275 = vpow2.f32 %v431_v29  ;;  %v429_v33 = vmul.f32 1.442695, %v420_v32 }
 0x21d   :  { %2277 = vpow2.f32 %v234_v31 }
 0x21e   :  { %2279 = vpow2.f32 %v429_v33 }
 0x228   :  { %v2274_v35 = vpop.eup %2273 }
 0x229   :  { %v2276_v36 = vpop.eup %2275  ;;  %v239_v37 = vmul.f32 %v2274_v35, %v69_v34 }
 0x22a   :  { %v2278_v39 = vpop.eup %2277  ;;  %v434_v40 = vmul.f32 %v2276_v36, %v69_v34 }
 0x22b   :  { %v243_v41 = vsel %vm148_vm2, %v239_v37, 0.0  ;;  %v238_v43 = vmul.f32 %v2278_v39, %v68_v38  ;;  %v2280_v44 = vpop.eup %2279 }
 0x22c   :  { %244 = vadd.xlane.f32.xlu1 %v243_v41  ;;  %v438_v42 = vsel %vm148_vm2, %v434_v40, 0.0  ;;  %v433_v46 = vmul.f32 %v2280_v44, %v68_v38 }
 0x22d   :  { %439 = vadd.xlane.f32.xlu0 %v438_v42  ;;  %v240_v45 = vsel %vm148_vm2, %v238_v43, 0.0 }
 0x22e   :  { %v435_v47 = vsel %vm148_vm2, %v433_v46, 0.0 }
 0x231   :  { %241 = vadd.xlane.f32.xlu0 %v240_v45 }
 0x235   :  { %436 = vadd.xlane.f32.xlu0 %v435_v47  ;;  %v670_v47 = vsub.s32 2, %v2440_v7 }
 0x23d   :  { %447 = vrot.lane.b32.xlu1 %v2455_v16, %s2332_s24  ;;  %v636_v16 = vrot.slane %v2448_v9, %v2515_v13 }
 0x241   :  { %445 = vrot.lane.b32.xlu1 %v2452_v12, %s2332_s24 }
 0x24b   :  { %250 = vrot.lane.b32.xlu0 %v2452_v12, %s2331_s19 }
 0x2b5   :  { %v245_v49 = vpop.xlane.xlu1 %244 }
 0x2b6   :  { %v440_v48 = vpop.xlane.xlu0 %439  ;;  %2281 = vrcp.f32 %v245_v49 }
 0x2b9   :  { %v448_v53 = vpop.permute.xlu1 %447 }
 0x2ba   :  { %v242_v50 = vpop.xlane.xlu0 %241 }
 0x2bb   :  { %2283 = vrcp.f32 %v242_v50  ;;  %v671_v50 = vrot.slane %v2448_v9, %v670_v47 }
 0x2bc   :  { %2285 = vrcp.f32 %v440_v48 }
 0x2bd   :  { %v446_v60 = vpop.permute.xlu1 %445 }
 0x2be   :  { %v437_v51 = vpop.xlane.xlu0 %436 }
 0x2bf   :  { %2287 = vrcp.f32 %v437_v51  ;;  %v676_v51 = vsub.s32 3, %v2440_v7 }
 0x2c2   :  { %v251_v52 = vpop.permute.xlu0 %250 }
 0x2c3   :  { %2049 = vmatprep.subr.mxu1 %v251_v52  ;;  %v2282_v54 = vpop.eup %2281 }
 0x2c4   :  { %2050 = vmatpush3.msra.mxu1 %v251_v52  ;;  %v249_v57 = vmul.f32 %v2282_v54, %v239_v37 }
 0x2c5   :  { %2061 = vmatprep.subr.mxu1 %v448_v53 }
 0x2c8   :  { %v2284_v55 = vpop.eup %2283 }
 0x2c9   :  { %v248_v56 = vmul.f32 %v2284_v55, %v238_v43  ;;  %v2286_v58 = vpop.eup %2285  ;;  %v677_v55 = vrot.slane %v2448_v9, %v676_v51 }
 0x2ca   :  { %v444_v62 = vmul.f32 %v2286_v58, %v434_v40  ;;  %v2136_v40 = vld [vmem:[%s2718_s4] sm:$0xff]  }
 0x2cb   :  { %2051 = vmatprep.mubr.msk.f32.mxu1 %vm148_vm2, %v248_v56 }
 0x2cc   :  { %v2288_v59 = vpop.eup %2287  ;;  %2052 = vmatmul.mubr.msk.f32.vlgmr.msra.gmra.mxu1 %vm148_vm2, %v249_v57 }
 0x2cd   :  { %2062 = vmatpush3.msra.mxu1 %v448_v53  ;;  %v443_v61 = vmul.f32 %v2288_v59, %v433_v46 }
 0x2ce   :  { %2063 = vmatprep.subr.mxu1 %v446_v60 }
 0x2cf   :  { %2064 = vmatpush3.msra.mxu1 %v446_v60  ;;  %2065 = vmatprep.mubr.msk.f32.mxu1 %vm148_vm2, %v443_v61  ;;  %v2137_v60 = vld [vmem:[%s2719_s5 + $0x18] sm:$0xff]   ;;  %v2138_v61 = vld [vmem:[%s2719_s5 + $0x10] sm:$0xff]  }
 0x2d0   :  { %2066 = vmatmul.mubr.msk.f32.vlgmr.msra.gmra.mxu1 %vm148_vm2, %v444_v62  ;;  %2074 = vmatprep.subr.bf16.mxu1 %v2326_v0  ;;  %v2139_v62 = vld [vmem:[%s2719_s5 + $0x8] sm:$0xff]  }
 0x2d1   :  { %2076 = vmatprep.mubr.msk.bf16.mxu1 %vm2327_vm0, %v2326_v0  ;;  %2075 = vmatpush3.bf16.msra.mxu1 %v2133_v63  ;;  %v2140_v63 = vld [vmem:[%s2719_s5] sm:$0xff]  }
 0x2d2   :  { %2088 = vmatprep.subr.bf16.mxu1 %v2326_v0 }
 0x38c   :  { %v2053_v2 = vpop.f32.mrf.mxu1 }
 0x38e   :  { %v328_v5 = vpop.f32.mrf.mxu1 }
 0x38f   :  { %v337_v6 = vpack.c.bf16 %v2053_v2, %v328_v5  ;;  %v688_v2 = vrot.slane %v2448_v9, %v687_v1  ;;  %v2158_v1 = vld [vmem:[#allocation2 + $0x64] ss:$8 sps:$4 sm:$0xff]  }
 0x390   :  { %v2067_v10 = vpop.f32.mrf.mxu1 }
 0x391   :  { %2077 = vmatmul.mubr.msk.bf16.vlgmr.msra.gmra.mxu1 %vm148_vm2, %v337_v6 }
 0x392   :  { %v523_v11 = vpop.f32.mrf.mxu1  ;;  %2096 = vmatprep.mubr.msk.bf16.mxu1 %vm2327_vm0, %v2326_v0  ;;  %2089 = vmatpush3.bf16.msra.mxu1 %v2137_v60  ;;  %v2333_v60 = vmov 0  }
 0x393   :  { %v532_v12 = vpack.c.bf16 %v2067_v10, %v523_v11  ;;  %2090 = vmatprep.subr.bf16.mxu1 %v2326_v0 }
 0x395   :  { %2071 = vmatmul.mubr.msk.bf16.vlgmr.msra.gmra.mxu0 %vm148_vm2, %v532_v12 }
 0x396   :  { %2084 = vmatprep.mubr.msk.bf16.mxu0 %vm2327_vm0, %v2326_v0  ;;  %2091 = vmatpush3.bf16.msra.mxu1 %v2138_v61  ;;  %v2149_v61 = vld [vmem:[%s2721_s7 + $0x2c] ss:$16 sps:$4 sm:$0xff]  }
 0x397   :  { %2092 = vmatprep.subr.bf16.mxu1 %v2326_v0 }
 0x39a   :  { %2093 = vmatpush3.bf16.msra.mxu1 %v2139_v62  ;;  %v2153_v62 = vld [vmem:[#allocation2 + $0x70] ss:$8 sps:$4 sm:$0xff]  }
 0x39b   :  { %2094 = vmatprep.subr.bf16.mxu1 %v2326_v0 }
 0x39e   :  { %2095 = vmatpush3.bf16.msra.mxu1 %v2140_v63  ;;  %v2155_v63 = vld [vmem:[#allocation2 + $0x74] ss:$8 sps:$4 sm:$0xff]  }
 0x39f   :  { %1453 = vmatprep.subr.bf16.mxu1 %v2155_v63  ;;  %v2192_v63 = vld [vmem:[#allocation2 + $0x120] ss:$8 sps:$4 sm:$0xff]  }
 0x451   :  { %v626_v14 = vpop.f32.mrf.mxu1 }
 0x453   :  { %v2078_v15 = vpop.f32.mrf.mxu1 }
 0x455   :  { %v576_v17 = vpop.f32.mrf.mxu0  ;;  %v629_v18 = vpop.f32.mrf.mxu1 }
 0x456   :  { %v627_v19 = vadd.f32 %v626_v14, %v576_v17 }
 0x457   :  { %v2072_v20 = vpop.f32.mrf.mxu0  ;;  %v2079_v21 = vpop.f32.mrf.mxu1 }
 0x458   :  { %v637_v22 = vadd.f32 %v636_v16, %v627_v19 }
 0x459   :  { %v579_v23 = vpop.f32.mrf.mxu0 }
 0x45a   :  { %v630_v24 = vadd.f32 %v629_v18, %v579_v23  ;;  %v639_v25 = vadd.f32 %v637_v22, %v2429_v3 }
 0x45b   :  { %v2073_v26 = vpop.f32.mrf.mxu0 }
 0x45c   :  { %v638_v27 = vadd.f32 %v636_v16, %v630_v24  ;;  %v641_v28 = vsel %vm91_vm1, %v639_v25, 0.0 }
 0x45d   :  { %642 = vadd.xlane.f32.xlu0 %v641_v28 }
 0x45e   :  { %v640_v29 = vadd.f32 %v638_v27, %v2434_v4  ;;  %v2135_v4 = vld [vmem:[%s2718_s4 + $0x8] sm:$0xff]  }
 0x45f   :  { %2081 = vmatpush3.bf16.msra.mxu0 %v2135_v4 }
 0x460   :  { %v644_v30 = vsel %vm91_vm1, %v640_v29, 0.0  ;;  %2082 = vmatprep.subr.bf16.mxu0 %v2326_v0 }
 0x461   :  { %645 = vadd.xlane.f32.xlu1 %v644_v30 }
 0x463   :  { %2083 = vmatpush3.bf16.msra.mxu0 %v2136_v40 }
 0x4e6   :  { %v643_v31 = vpop.xlane.xlu0 %642 }
 0x4e7   :  { %v648_v32 = vmul.f32 0.03125, %v643_v31 }
 0x4e9   :  { %v650_v33 = vsub.f32 %v639_v25, %v648_v32 }
 0x4ea   :  { %v646_v34 = vpop.xlane.xlu1 %645 }
 0x4eb   :  { %v649_v35 = vmul.f32 0.03125, %v646_v34  ;;  %v652_v36 = vmul.f32 %v650_v33, %v650_v33  ;;  %v774_v34 = vsub.s32 5, %v2440_v7 }
 0x4ed   :  { %v651_v37 = vsub.f32 %v640_v29, %v649_v35  ;;  %v654_v38 = vsel %vm91_vm1, %v652_v36, 0.0  ;;  %v775_v35 = vrot.slane %v2448_v9, %v774_v34 }
 0x4ee   :  { %655 = vadd.xlane.f32.xlu0 %v654_v38 }
 0x4ef   :  { %v653_v3 = vmul.f32 %v651_v37, %v651_v37 }
 0x4f1   :  { %v657_v39 = vsel %vm91_vm1, %v653_v3, 0.0 }
 0x4f2   :  { %658 = vadd.xlane.f32.xlu0 %v657_v39 }
 0x577   :  { %v656_v41 = vpop.xlane.xlu0 %655 }
 0x578   :  { %v660_v42 = vmul.f32 0.03125, %v656_v41 }
 0x57a   :  { %v662_v43 = vadd.f32 1e-12, %v660_v42 }
 0x57b   :  { %v659_v44 = vpop.xlane.xlu0 %658 }
 0x57c   :  { %2289 = vrsqrt.f32 %v662_v43  ;;  %v661_v45 = vmul.f32 0.03125, %v659_v44 }
 0x57e   :  { %v663_v46 = vadd.f32 1e-12, %v661_v45 }
 0x580   :  { %2291 = vrsqrt.f32 %v663_v46 }
 0x589   :  { %v2290_v48 = vpop.eup %2289 }
 0x58a   :  { %v666_v49 = vmul.f32 %v2290_v48, %v650_v33 }
 0x58c   :  { %v672_v54 = vmul.f32 %v671_v50, %v666_v49 }
 0x58d   :  { %v2292_v52 = vpop.eup %2291 }
 0x58e   :  { %v667_v53 = vmul.f32 %v2292_v52, %v651_v37  ;;  %v678_v57 = vadd.f32 %v677_v55, %v672_v54 }
 0x590   :  { %v673_v56 = vmul.f32 %v671_v50, %v667_v53 }
 0x592   :  { %v679_v58 = vadd.f32 %v677_v55, %v673_v56  ;;  %v2143_v56 = vld [vmem:[%s2721_s7 + $0x24] ss:$16 sps:$4 sm:$0xff]  }
 0x593   :  { %971 = vmatprep.subr.bf16.mxu0 %v2143_v56  ;;  %v2176_v56 = vld [vmem:[#allocation2 + $0x154] ss:$8 sps:$4 sm:$0xff]  }
 0x594   :  { %v680_v59 = vpack.c.bf16 %v679_v58, %v678_v57 }
 0x596   :  { %2085 = vmatmul.mubr.msk.bf16.vlgmr.msra.gmra.mxu0 %vm91_vm1, %v680_v59  ;;  %v2144_v59 = vld [vmem:[%s2721_s7] ss:$16 sps:$4 sm:$0xff]  }
 0x597   :  { %991 = vmatprep.mubr.bf16.mxu0 %v2333_v60 }
 0x656   :  { %v738_v5 = vpop.f32.mrf.mxu0 }
 0x657   :  { %v739_v6 = vadd.f32 %v738_v5, %v688_v2  ;;  %v2161_v5 = vld [vmem:[#allocation2 + $0x54] ss:$8 sps:$4 sm:$0xff]  }
 0x658   :  { %v2086_v10 = vpop.f32.mrf.mxu0 }
 0x659   :  { %v745_v11 = vmul.f32 %v739_v6, %v739_v6  ;;  %v2167_v10 = vld [vmem:[#allocation2 + $0x44] ss:$8 sps:$4 sm:$0xff]  }
 0x65a   :  { %v741_v12 = vpop.f32.mrf.mxu0 }
 0x65b   :  { %v747_v14 = vmul.f32 %v745_v11, %v739_v6  ;;  %v742_v15 = vadd.f32 %v741_v12, %v688_v2  ;;  %v2156_v2 = vld [vmem:[#allocation2 + $0x60] ss:$8 sps:$4 sm:$0xff]   ;;  %v2173_v12 = vld [vmem:[#allocation2 + $0x34] ss:$8 sps:$4 sm:$0xff]  }
 0x65c   :  { %v2087_v16 = vpop.f32.mrf.mxu0  ;;  %v2165_v11 = vld [vmem:[#allocation2 + $0x40] ss:$8 sps:$4 sm:$0xff]  }
 0x65d   :  { %v749_v17 = vmul.f32 0.044715, %v747_v14  ;;  %v746_v18 = vmul.f32 %v742_v15, %v742_v15  ;;  %v2171_v14 = vld [vmem:[#allocation2 + $0x30] ss:$8 sps:$4 sm:$0xff]   ;;  %v2177_v16 = vld [vmem:[#allocation2 + $0x20] ss:$8 sps:$4 sm:$0xff]  }
 0x65f   :  { %v751_v19 = vadd.f32 %v749_v17, %v739_v6  ;;  %v748_v20 = vmul.f32 %v746_v18, %v742_v15  ;;  %v2185_v17 = vld [vmem:[#allocation2 + $0x14] ss:$8 sps:$4 sm:$0xff]   ;;  %v2183_v18 = vld [vmem:[#allocation2 + $0x10] ss:$8 sps:$4 sm:$0xff]  }
 0x661   :  { %v753_v21 = vmul.f32 0.7978846, %v751_v19  ;;  %v750_v22 = vmul.f32 0.044715, %v748_v20  ;;  %v2191_v19 = vld [vmem:[#allocation2 + $0x4] ss:$8 sps:$4 sm:$0xff]  }
 0x662   :  { %v2189_v20 = vld [vmem:[#allocation2] ss:$8 sps:$4 sm:$0xff]  }
 0x663   :  { %2293 = vtanh.f32 %v753_v21  ;;  %v752_v23 = vadd.f32 %v750_v22, %v742_v15  ;;  %v2197_v21 = vld [vmem:[#allocation2 + $0xf4] ss:$8 sps:$4 sm:$0xff]   ;;  %v2195_v22 = vld [vmem:[#allocation2 + $0xf0] ss:$8 sps:$4 sm:$0xff]  }
 0x665   :  { %v754_v24 = vmul.f32 0.7978846, %v752_v23  ;;  %v2203_v23 = vld [vmem:[#allocation2 + $0xe4] ss:$8 sps:$4 sm:$0xff]  }
 0x667   :  { %2295 = vtanh.f32 %v754_v24  ;;  %v2201_v24 = vld [vmem:[#allocation2 + $0xe0] ss:$8 sps:$4 sm:$0xff]  }
 0x670   :  { %v2294_v25 = vpop.eup %2293 }
 0x671   :  { %v757_v26 = vadd.f32 1.0, %v2294_v25  ;;  %v2209_v25 = vld [vmem:[#allocation2 + $0xd4] ss:$8 sps:$4 sm:$0xff]  }
 0x673   :  { %v759_v28 = vmul.f32 0.5, %v757_v26  ;;  %v2207_v26 = vld [vmem:[#allocation2 + $0xd0] ss:$8 sps:$4 sm:$0xff]  }
 0x674   :  { %v2296_v27 = vpop.eup %2295 }
 0x675   :  { %v758_v29 = vadd.f32 1.0, %v2296_v27  ;;  %v761_v31 = vmul.f32 %v759_v28, %v739_v6  ;;  %v2159_v6 = vld [vmem:[#allocation2 + $0x50] ss:$8 sps:$4 sm:$0xff]   ;;  %v2215_v27 = vld [vmem:[#allocation2 + $0xc4] ss:$8 sps:$4 sm:$0xff]  }
 0x676   :  { %v2213_v28 = vld [vmem:[#allocation2 + $0xc0] ss:$8 sps:$4 sm:$0xff]  }
 0x677   :  { %v760_v30 = vmul.f32 0.5, %v758_v29  ;;  %v2221_v29 = vld [vmem:[#allocation2 + $0xb4] ss:$8 sps:$4 sm:$0xff]  }
 0x679   :  { %v762_v32 = vmul.f32 %v760_v30, %v742_v15  ;;  %v2179_v15 = vld [vmem:[#allocation2 + $0x24] ss:$8 sps:$4 sm:$0xff]   ;;  %v2219_v30 = vld [vmem:[#allocation2 + $0xb0] ss:$8 sps:$4 sm:$0xff]  }
 0x67b   :  { %v763_v33 = vpack.c.bf16 %v762_v32, %v761_v31 }
 0x67d   :  { %2097 = vmatmul.mubr.msk.bf16.vlgmr.msra.gmra.mxu1 %vm800_vm3, %v763_v33 }
 0x67e   :  { %1454 = vmatpush1.bf16.msra.mxu1 %v2153_v62  ;;  %v2194_v62 = vld [vmem:[#allocation2 + $0x124] ss:$8 sps:$4 sm:$0xff]  }
 0x67f   :  { %1455 = vmatprep.subr.bf16.mxu1 %v2158_v1  ;;  %v2200_v1 = vld [vmem:[#allocation2 + $0x114] ss:$8 sps:$4 sm:$0xff]  }
 0x682   :  { %1456 = vmatpush1.bf16.msra.mxu1 %v2156_v2  ;;  %v2198_v2 = vld [vmem:[#allocation2 + $0x110] ss:$8 sps:$4 sm:$0xff]  }
 0x683   :  { %1457 = vmatprep.subr.bf16.mxu1 %v2161_v5  ;;  %v2206_v5 = vld [vmem:[#allocation2 + $0x104] ss:$8 sps:$4 sm:$0xff]  }
 0x686   :  { %1458 = vmatpush1.bf16.msra.mxu1 %v2159_v6  ;;  %v2204_v6 = vld [vmem:[#allocation2 + $0x100] ss:$8 sps:$4 sm:$0xff]  }
 0x687   :  { %1459 = vmatprep.subr.bf16.mxu1 %v2167_v10  ;;  %v2212_v10 = vld [vmem:[#allocation2 + $0x1f4] ss:$8 sps:$4 sm:$0xff]  }
 0x68a   :  { %1460 = vmatpush1.bf16.msra.mxu1 %v2165_v11  ;;  %v2210_v11 = vld [vmem:[#allocation2 + $0x1f0] ss:$8 sps:$4 sm:$0xff]  }
 0x68b   :  { %1461 = vmatprep.subr.bf16.mxu1 %v2173_v12  ;;  %v2218_v12 = vld [vmem:[#allocation2 + $0x1e4] ss:$8 sps:$4 sm:$0xff]  }
 0x68e   :  { %1462 = vmatpush1.bf16.msra.mxu1 %v2171_v14  ;;  %v2216_v14 = vld [vmem:[#allocation2 + $0x1e0] ss:$8 sps:$4 sm:$0xff]  }
 0x68f   :  { %1463 = vmatprep.subr.bf16.mxu1 %v2179_v15  ;;  %v2224_v15 = vld [vmem:[#allocation2 + $0x1d4] ss:$8 sps:$4 sm:$0xff]  }
 0x692   :  { %1464 = vmatpush1.bf16.msra.mxu1 %v2177_v16  ;;  %v2222_v16 = vld [vmem:[#allocation2 + $0x1d0] ss:$8 sps:$4 sm:$0xff]  }
 0x693   :  { %1465 = vmatprep.subr.bf16.mxu1 %v2185_v17  ;;  %v2227_v17 = vld [vmem:[#allocation2 + $0xa4] ss:$8 sps:$4 sm:$0xff]  }
 0x696   :  { %1466 = vmatpush1.bf16.msra.mxu1 %v2183_v18  ;;  %v2230_v18 = vld [vmem:[#allocation2 + $0x1c4] ss:$8 sps:$4 sm:$0xff]  }
 0x697   :  { %1467 = vmatprep.subr.bf16.mxu1 %v2191_v19  ;;  %v2225_v19 = vld [vmem:[#allocation2 + $0xa0] ss:$8 sps:$4 sm:$0xff]  }
 0x69a   :  { %1468 = vmatpush1.bf16.msra.mxu1 %v2189_v20  ;;  %v2228_v20 = vld [vmem:[#allocation2 + $0x1c0] ss:$8 sps:$4 sm:$0xff]  }
 0x69b   :  { %1469 = vmatprep.subr.bf16.mxu1 %v2197_v21  ;;  %v2233_v21 = vld [vmem:[#allocation2 + $0x94] ss:$8 sps:$4 sm:$0xff]  }
 0x69e   :  { %1470 = vmatpush2.bf16.msra.mxu1 %v2195_v22  ;;  %v2236_v22 = vld [vmem:[#allocation2 + $0x1b4] ss:$8 sps:$4 sm:$0xff]  }
 0x69f   :  { %1471 = vmatprep.subr.bf16.mxu1 %v2203_v23  ;;  %v2231_v23 = vld [vmem:[#allocation2 + $0x90] ss:$8 sps:$4 sm:$0xff]  }
 0x6a2   :  { %1472 = vmatpush2.bf16.msra.mxu1 %v2201_v24  ;;  %v2234_v24 = vld [vmem:[#allocation2 + $0x1b0] ss:$8 sps:$4 sm:$0xff]  }
 0x6a3   :  { %1473 = vmatprep.subr.bf16.mxu1 %v2209_v25  ;;  %v2239_v25 = vld [vmem:[#allocation2 + $0x84] ss:$8 sps:$4 sm:$0xff]  }
 0x6a6   :  { %1474 = vmatpush2.bf16.msra.mxu1 %v2207_v26  ;;  %v2242_v26 = vld [vmem:[#allocation2 + $0x1a4] ss:$8 sps:$4 sm:$0xff]  }
 0x6a7   :  { %1475 = vmatprep.subr.bf16.mxu1 %v2215_v27  ;;  %v2237_v27 = vld [vmem:[#allocation2 + $0x80] ss:$8 sps:$4 sm:$0xff]  }
 0x6aa   :  { %1476 = vmatpush2.bf16.msra.mxu1 %v2213_v28  ;;  %v2240_v28 = vld [vmem:[#allocation2 + $0x1a0] ss:$8 sps:$4 sm:$0xff]  }
 0x6ab   :  { %1477 = vmatprep.subr.bf16.mxu1 %v2221_v29  ;;  %v2245_v29 = vld [vmem:[#allocation2 + $0x194] ss:$8 sps:$4 sm:$0xff]  }
 0x6ae   :  { %1478 = vmatpush2.bf16.msra.mxu1 %v2219_v30  ;;  %v2243_v30 = vld [vmem:[#allocation2 + $0x190] ss:$8 sps:$4 sm:$0xff]  }
 0x6af   :  { %1479 = vmatprep.subr.bf16.mxu1 %v2227_v17  ;;  %v2261_v17 = vld [vmem:[%s2725_s11 + $0x48] sm:$0xff]  }
 0x6b2   :  { %1480 = vmatpush2.bf16.msra.mxu1 %v2225_v19  ;;  %v2263_v19 = vld [vmem:[%s2725_s11 + $0x40] sm:$0xff]  }
 0x6b3   :  { %1481 = vmatprep.subr.bf16.mxu1 %v2233_v21  ;;  %v2265_v21 = vld [vmem:[%s2727_s13 + $0x38] sm:$0xff]  }
 0x6b6   :  { %1482 = vmatpush2.bf16.msra.mxu1 %v2231_v23  ;;  %v2267_v23 = vld [vmem:[%s2727_s13 + $0x28] sm:$0xff]  }
 0x6b7   :  { %1483 = vmatprep.subr.bf16.mxu1 %v2239_v25 }
 0x6ba   :  { %1484 = vmatpush2.bf16.msra.mxu1 %v2237_v27  ;;  %v1121_v27 = vld [vmem:[%s2724_s10] sm:$0x3] }
 0x73d   :  { %v838_v36 = vpop.f32.mrf.mxu1 }
 0x73e   :  { %v839_v37 = vadd.f32 %v838_v36, %v775_v35 }
 0x73f   :  { %v2098_v38 = vpop.f32.mrf.mxu1 }
 0x740   :  { %v845_v3 = vadd.f32 %v839_v37, %v678_v57  ;;  %v2141_v57 = vld [vmem:[%s2721_s7 + $0x20] ss:$16 sps:$4 sm:$0xff]   ;;  %v875_v37 = vsub.s32 6, %v2440_v7 }
 0x741   :  { %v841_v39 = vpop.f32.mrf.mxu1  ;;  %972 = vmatpush1.bf16.msra.mxu0 %v2141_v57  ;;  %v2174_v57 = vld [vmem:[#allocation2 + $0x150] ss:$8 sps:$4 sm:$0xff]  }
 0x742   :  { %v842_v4 = vadd.f32 %v841_v39, %v775_v35  ;;  %v847_v40 = vsel %vm91_vm1, %v845_v3, 0.0  ;;  %v876_v39 = vrot.slane %v2448_v9, %v875_v37 }
 0x743   :  { %848 = vadd.xlane.f32.xlu1 %v847_v40  ;;  %v2099_v41 = vpop.f32.mrf.mxu1 }
 0x744   :  { %v846_v42 = vadd.f32 %v842_v4, %v679_v58  ;;  %v2146_v58 = vld [vmem:[%s2721_s7 + $0x4] ss:$16 sps:$4 sm:$0xff]   ;;  %v881_v4 = vsub.s32 7, %v2440_v7 }
 0x745   :  { %973 = vmatprep.subr.bf16.mxu0 %v2146_v58  ;;  %v2182_v58 = vld [vmem:[#allocation2 + $0x144] ss:$8 sps:$4 sm:$0xff]  }
 0x746   :  { %v850_v43 = vsel %vm91_vm1, %v846_v42, 0.0  ;;  %974 = vmatpush1.bf16.msra.mxu0 %v2144_v59  ;;  %v2180_v59 = vld [vmem:[#allocation2 + $0x140] ss:$8 sps:$4 sm:$0xff]  }
 0x747   :  { %851 = vadd.xlane.f32.xlu0 %v850_v43  ;;  %1014 = vmatprep.subr.bf16.mxu0 %v2149_v61  ;;  %v882_v43 = vrot.slane %v2448_v9, %v881_v4  ;;  %v2164_v9 = vld [vmem:[#allocation2 + $0x174] ss:$8 sps:$4 sm:$0xff]   ;;  %v2186_v61 = vld [vmem:[#allocation2 + $0x130] ss:$8 sps:$4 sm:$0xff]  }
 0x7cc   :  { %v849_v44 = vpop.xlane.xlu1 %848 }
 0x7cd   :  { %v853_v45 = vmul.f32 0.03125, %v849_v44 }
 0x7cf   :  { %v2562_v46 = vsub.f32 %v845_v3, %v853_v45 }
 0x7d0   :  { %v852_v48 = vpop.xlane.xlu0 %851 }
 0x7d1   :  { %v854_v49 = vmul.f32 0.03125, %v852_v48  ;;  %v857_v50 = vmul.f32 %v2562_v46, %v2562_v46 }
 0x7d3   :  { %v2566_v52 = vsub.f32 %v846_v42, %v854_v49  ;;  %v859_v53 = vsel %vm91_vm1, %v857_v50, 0.0  ;;  %v2147_v49 = vld [vmem:[%s2721_s7 + $0x28] ss:$16 sps:$4 sm:$0xff]  }
 0x7d4   :  { %860 = vadd.xlane.f32.xlu1 %v859_v53  ;;  %v2162_v53 = vld [vmem:[#allocation2 + $0x170] ss:$8 sps:$4 sm:$0xff]  }
 0x7d5   :  { %v858_v54 = vmul.f32 %v2566_v52, %v2566_v52 }
 0x7d7   :  { %v862_v55 = vsel %vm91_vm1, %v858_v54, 0.0  ;;  %v2170_v54 = vld [vmem:[#allocation2 + $0x164] ss:$8 sps:$4 sm:$0xff]  }
 0x7d8   :  { %863 = vadd.xlane.f32.xlu0 %v862_v55  ;;  %v2168_v55 = vld [vmem:[#allocation2 + $0x160] ss:$8 sps:$4 sm:$0xff]  }
 0x85d   :  { %v861_v31 = vpop.xlane.xlu1 %860 }
 0x85e   :  { %v865_v32 = vmul.f32 0.03125, %v861_v31  ;;  %v2248_v31 = vld [vmem:[#allocation2 + $0x184] ss:$8 sps:$4 sm:$0xff]  }
 0x860   :  { %v867_v33 = vadd.f32 1e-12, %v865_v32  ;;  %v2246_v32 = vld [vmem:[#allocation2 + $0x180] ss:$8 sps:$4 sm:$0xff]  }
 0x861   :  { %v864_v34 = vpop.xlane.xlu0 %863 }
 0x862   :  { %2297 = vrsqrt.f32 %v867_v33  ;;  %v866_v35 = vmul.f32 0.03125, %v864_v34  ;;  %v2249_v33 = vld [vmem:[%s2725_s11 + $0x78] sm:$0xff]   ;;  %v894_v34 = vld [vmem:[%s2722_s8] sm:$0xf] }
 0x863   :  { %2001 = vmatprep.subr.bf16.mxu1 %v2249_v33  ;;  %v899_v37 = vrot.slane %v894_v34, %v2443_v8 }
 0x864   :  { %v868_v36 = vadd.f32 1e-12, %v866_v35 }
 0x866   :  { %2299 = vrsqrt.f32 %v868_v36  ;;  %v903_v36 = vrot.slane %v894_v34, %v2515_v13 }
 0x86f   :  { %v2298_v38 = vpop.eup %2297 }
 0x870   :  { %v871_v3 = vmul.f32 %v2298_v38, %v2562_v46  ;;  %v2152_v46 = vld [vmem:[%s2721_s7 + $0xc] ss:$16 sps:$4 sm:$0xff]  }
 0x872   :  { %v877_v42 = vmul.f32 %v876_v39, %v871_v3 }
 0x873   :  { %v2300_v40 = vpop.eup %2299 }
 0x874   :  { %v872_v41 = vmul.f32 %v2300_v40, %v2566_v52  ;;  %v883_v45 = vadd.f32 %v882_v43, %v877_v42  ;;  %v2150_v52 = vld [vmem:[%s2721_s7 + $0x8] ss:$16 sps:$4 sm:$0xff]  }
 0x876   :  { %v878_v44 = vmul.f32 %v876_v39, %v872_v41 }
 0x878   :  { %v884_v48 = vadd.f32 %v882_v43, %v878_v44 }
 0x87a   :  { %v885_v50 = vpack.c.bf16 %v884_v48, %v883_v45 }
 0x87c   :  { %1878 = vmatmul.mubr.msk.bf16.vlgmr.msra.gmra.mxu0 %vm91_vm1, %v885_v50 }
 0x87d   :  { %1015 = vmatpush1.bf16.msra.mxu0 %v2147_v49  ;;  %1034 = vmatprep.mubr.bf16.mxu0 %v2333_v60  ;;  %v2188_v60 = vld [vmem:[#allocation2 + $0x134] ss:$8 sps:$4 sm:$0xff]   ;;  %v911_v49 = vrot.slane %v894_v34, %v676_v51 }
 0x87e   :  { %1016 = vmatprep.subr.bf16.mxu0 %v2152_v46  ;;  %v907_v46 = vrot.slane %v894_v34, %v670_v47  ;;  %v2252_v47 = vld [vmem:[%s2725_s11 + $0x30] sm:$0xff]  }
 0x881   :  { %1017 = vmatpush1.bf16.msra.mxu0 %v2150_v52 }
 0x882   :  { %1496 = vmatprep.subr.bf16.mxu0 %v2164_v9 }
 0x884   :  { %1879 = vmatmul.mubr.msk.bf16.vlgmr.msra.gmra.mxu0 %vm91_vm1, %v885_v50 }
 0x885   :  { %1497 = vmatpush1.bf16.msra.mxu0 %v2162_v53  ;;  %v2250_v53 = vld [vmem:[%s2725_s11 + $0x38] sm:$0xff]  }
 0x886   :  { %1498 = vmatprep.subr.bf16.mxu0 %v2170_v54 }
 0x889   :  { %1499 = vmatpush1.bf16.msra.mxu0 %v2168_v55 }
 0x88a   :  { %1500 = vmatprep.subr.bf16.mxu0 %v2176_v56  ;;  %v2251_v56 = vld [vmem:[%s2725_s11 + $0x70] sm:$0xff]  }
 0x88d   :  { %1501 = vmatpush1.bf16.msra.mxu0 %v2174_v57 }
 0x88e   :  { %1502 = vmatprep.subr.bf16.mxu0 %v2182_v58 }
 0x891   :  { %1503 = vmatpush1.bf16.msra.mxu0 %v2180_v59 }
 0x892   :  { %1504 = vmatprep.subr.bf16.mxu0 %v2188_v60 }
 0x895   :  { %1505 = vmatpush1.bf16.msra.mxu0 %v2186_v61  ;;  %v2253_v61 = vld [vmem:[%s2725_s11 + $0x68] sm:$0xff]  }
 0x896   :  { %1506 = vmatprep.subr.bf16.mxu0 %v2194_v62 }
 0x899   :  { %1507 = vmatpush1.bf16.msra.mxu0 %v2192_v63 }
 0x89a   :  { %1508 = vmatprep.subr.bf16.mxu0 %v2200_v1 }
 0x89d   :  { %1509 = vmatpush1.bf16.msra.mxu0 %v2198_v2 }
 0x89e   :  { %1510 = vmatprep.subr.bf16.mxu0 %v2206_v5  ;;  %v2254_v5 = vld [vmem:[%s2725_s11 + $0x28] sm:$0xff]  }
 0x8a1   :  { %1511 = vmatpush1.bf16.msra.mxu0 %v2204_v6 }
 0x8a2   :  { %1512 = vmatprep.subr.bf16.mxu0 %v2212_v10  ;;  %v2255_v10 = vld [vmem:[%s2725_s11 + $0x60] sm:$0xff]  }
 0x8a5   :  { %1513 = vmatpush2.bf16.msra.mxu0 %v2210_v11  ;;  %v2256_v11 = vld [vmem:[%s2725_s11 + $0x20] sm:$0xff]  }
 0x8a6   :  { %1514 = vmatprep.subr.bf16.mxu0 %v2218_v12  ;;  %v2257_v12 = vld [vmem:[%s2725_s11 + $0x58] sm:$0xff]  }
 0x8a9   :  { %1515 = vmatpush2.bf16.msra.mxu0 %v2216_v14  ;;  %v2258_v14 = vld [vmem:[%s2725_s11 + $0x18] sm:$0xff]  }
 0x8aa   :  { %1516 = vmatprep.subr.bf16.mxu0 %v2224_v15  ;;  %v2259_v15 = vld [vmem:[%s2725_s11 + $0x50] sm:$0xff]  }
 0x8ad   :  { %1517 = vmatpush2.bf16.msra.mxu0 %v2222_v16  ;;  %v2260_v16 = vld [vmem:[%s2725_s11 + $0x10] sm:$0xff]  }
 0x8ae   :  { %1518 = vmatprep.subr.bf16.mxu0 %v2230_v18  ;;  %v2262_v18 = vld [vmem:[%s2725_s11 + $0x8] sm:$0xff]  }
 0x8b1   :  { %1519 = vmatpush2.bf16.msra.mxu0 %v2228_v20  ;;  %v2264_v20 = vld [vmem:[%s2725_s11] sm:$0xff]  }
 0x8b2   :  { %1520 = vmatprep.subr.bf16.mxu0 %v2236_v22  ;;  %v2266_v22 = vld [vmem:[%s2727_s13 + $0x30] sm:$0xff]  }
 0x8b5   :  { %1521 = vmatpush2.bf16.msra.mxu0 %v2234_v24  ;;  %v2268_v24 = vld [vmem:[%s2727_s13 + $0x20] sm:$0xff]  }
 0x8b6   :  { %1522 = vmatprep.subr.bf16.mxu0 %v2242_v26 }
 0x8b9   :  { %1523 = vmatpush2.bf16.msra.mxu0 %v2240_v28 }
 0x8ba   :  { %1524 = vmatprep.subr.bf16.mxu0 %v2245_v29  ;;  %v1130_v29 = vrot.slane %v1121_v27, %v2515_v13 }
 0x8bd   :  { %1525 = vmatpush2.bf16.msra.mxu0 %v2243_v30  ;;  %v1126_v30 = vrot.slane %v1121_v27, %v2443_v8  ;;  %v2269_v8 = vld [vmem:[%s2727_s13 + $0x18] sm:$0xff]  }
 0x8be   :  { %1526 = vmatprep.subr.bf16.mxu0 %v2248_v31 }
 0x8c1   :  { %1527 = vmatpush2.bf16.msra.mxu0 %v2246_v32 }
 0x8c2   :  { %2100 = vmatprep.subr.bf16.mxu0 %v2326_v0 }
 0x93c   :  { %v993_v35 = vpop.f32.mrf.mxu0 }
 0x93d   :  { %v994_v40 = vadd.f32 %v993_v35, %v899_v37 }
 0x93e   :  { %v995_v38 = vpop.f32.mrf.mxu0 }
 0x93f   :  { %v996_v39 = vadd.f32 %v995_v38, %v903_v36  ;;  %v1045_v50 = vmax.f32 %v994_v40, 0.0 }
 0x940   :  { %v997_v3 = vpop.f32.mrf.mxu0 }
 0x941   :  { %v998_v4 = vadd.f32 %v997_v3, %v899_v37  ;;  %v1046_v45 = vmax.f32 %v996_v39, 0.0 }
 0x942   :  { %v999_v41 = vpop.f32.mrf.mxu0 }
 0x943   :  { %v1000_v42 = vadd.f32 %v999_v41, %v903_v36  ;;  %v1049_v43 = vmax.f32 %v998_v4, 0.0 }
 0x944   :  { %v1036_v44 = vpop.f32.mrf.mxu0 }
 0x945   :  { %v1050_v48 = vmax.f32 %v1000_v42, 0.0  ;;  %v1053_v54 = vpack.c.bf16 %v1049_v43, %v1045_v50  ;;  %v1037_v51 = vadd.f32 %v1036_v44, %v907_v46  ;;  %v2271_v50 = vld [vmem:[%s2727_s13 + $0x8] sm:$0xff]  }
 0x946   :  { %v1038_v52 = vpop.f32.mrf.mxu0 }
 0x947   :  { %v1054_v9 = vpack.c.bf16 %v1050_v48, %v1046_v45  ;;  %v1039_v57 = vadd.f32 %v1038_v52, %v911_v49  ;;  %v1047_v1 = vmax.f32 %v1037_v51, 0.0 }
 0x948   :  { %v1040_v55 = vpop.f32.mrf.mxu0 }
 0x949   :  { %v1041_v58 = vadd.f32 %v1040_v55, %v907_v46  ;;  %1485 = vmatprep.mubr.bf16.mxu1 %v1054_v9  ;;  %v1048_v62 = vmax.f32 %v1039_v57, 0.0  ;;  %v2272_v46 = vld [vmem:[%s2727_s13] sm:$0xff]  }
 0x94a   :  { %v1042_v59 = vpop.f32.mrf.mxu0  ;;  %1486 = vmatmul.mubr.bf16.vlgmr.msra.gmra.mxu1 %v1053_v54  ;;  %v1944_v54 = vld [vmem:[%s2726_s12] ss:$0 sm:$0xff] }
 0x94b   :  { %v1043_v7 = vadd.f32 %v1042_v59, %v911_v49  ;;  %2002 = vmatpush3.bf16.msra.mxu1 %v2250_v53  ;;  %v1051_v60 = vmax.f32 %v1041_v58, 0.0  ;;  %v2270_v49 = vld [vmem:[%s2727_s13 + $0x10] sm:$0xff]  }
 0x94c   :  { %2003 = vmatprep.subr.bf16.mxu1 %v2251_v56 }
 0x94d   :  { %v1052_v63 = vmax.f32 %v1043_v7, 0.0  ;;  %v1055_v6 = vpack.c.bf16 %v1051_v60, %v1047_v1 }
 0x94f   :  { %v1056_v2 = vpack.c.bf16 %v1052_v63, %v1048_v62  ;;  %2004 = vmatpush3.bf16.msra.mxu1 %v2252_v47  ;;  %v1961_v47 = vld [vmem:[%s2728_s14] ss:$0 sm:$0xff] }
 0x950   :  { %2005 = vmatprep.subr.bf16.mxu1 %v2253_v61 }
 0x951   :  { %1528 = vmatprep.mubr.bf16.mxu0 %v1056_v2 }
 0x952   :  { %1529 = vmatmul.mubr.bf16.vlgmr.msra.gmra.mxu0 %v1055_v6 }
 0x953   :  { %2006 = vmatpush3.bf16.msra.mxu1 %v2254_v5  ;;  %2116 = vmatprep.mubr.msk.bf16.mxu0 %vm2327_vm0, %v2326_v0 }
 0x954   :  { %2007 = vmatprep.subr.bf16.mxu1 %v2255_v10  ;;  %2101 = vmatpush3.bf16.msra.mxu0 %v2265_v21 }
 0x955   :  { %2102 = vmatprep.subr.bf16.mxu0 %v2326_v0 }
 0x957   :  { %2008 = vmatpush3.bf16.msra.mxu1 %v2256_v11 }
 0x958   :  { %2009 = vmatprep.subr.bf16.mxu1 %v2257_v12  ;;  %2103 = vmatpush3.bf16.msra.mxu0 %v2266_v22 }
 0x959   :  { %2104 = vmatprep.subr.bf16.mxu0 %v2326_v0 }
 0x95b   :  { %2010 = vmatpush3.bf16.msra.mxu1 %v2258_v14 }
 0x95c   :  { %2011 = vmatprep.subr.bf16.mxu1 %v2259_v15  ;;  %2105 = vmatpush3.bf16.msra.mxu0 %v2267_v23 }
 0x95d   :  { %2106 = vmatprep.subr.bf16.mxu0 %v2326_v0 }
 0x95f   :  { %2012 = vmatpush3.bf16.msra.mxu1 %v2260_v16 }
 0x960   :  { %2013 = vmatprep.subr.bf16.mxu1 %v2261_v17  ;;  %2107 = vmatpush3.bf16.msra.mxu0 %v2268_v24 }
 0x961   :  { %2108 = vmatprep.subr.bf16.mxu0 %v2326_v0 }
 0x963   :  { %2014 = vmatpush3.bf16.msra.mxu1 %v2262_v18 }
 0x964   :  { %2015 = vmatprep.subr.bf16.mxu1 %v2263_v19  ;;  %2109 = vmatpush3.bf16.msra.mxu0 %v2269_v8 }
 0x965   :  { %2110 = vmatprep.subr.bf16.mxu0 %v2326_v0 }
 0x967   :  { %2016 = vmatpush3.bf16.msra.mxu1 %v2264_v20 }
 0x968   :  { %2111 = vmatpush3.bf16.msra.mxu0 %v2270_v49 }
 0x969   :  { %2112 = vmatprep.subr.bf16.mxu0 %v2326_v0 }
 0x96c   :  { %2113 = vmatpush3.bf16.msra.mxu0 %v2271_v50 }
 0x96d   :  { %2114 = vmatprep.subr.bf16.mxu0 %v2326_v0 }
 0x970   :  { %2115 = vmatpush3.bf16.msra.mxu0 %v2272_v46 }
 0xa0a   :  { %v1487_v25 = vpop.f32.mrf.mxu1 }
 0xa0b   :  { %v1488_v36 = vadd.f32 %v1487_v25, %v1126_v30 }
 0xa0c   :  { %v1489_v26 = vpop.f32.mrf.mxu1 }
 0xa0d   :  { %v1490_v34 = vadd.f32 %v1489_v26, %v1130_v29 }
 0xa0e   :  { %v1491_v28 = vpop.f32.mrf.mxu1 }
 0xa0f   :  { %v1492_v35 = vadd.f32 %v1491_v28, %v1126_v30 }
 0xa10   :  { %v1493_v32 = vpop.f32.mrf.mxu1 }
 0xa11   :  { %v1494_v38 = vadd.f32 %v1493_v32, %v1130_v29 }
 0xa12   :  { %v1530_v31 = vpop.f32.mrf.mxu0 }
 0xa13   :  { %v1531_v4 = vadd.f32 %v1530_v31, %v1488_v36 }
 0xa14   :  { %v1532_v33 = vpop.f32.mrf.mxu0 }
 0xa15   :  { %v1533_v3 = vadd.f32 %v1532_v33, %v1490_v34  ;;  %v1539_v45 = vmax.f32 %v1531_v4, 0.0 }
 0xa16   :  { %v1534_v37 = vpop.f32.mrf.mxu0 }
 0xa17   :  { %v1535_v39 = vadd.f32 %v1534_v37, %v1492_v35  ;;  %v1540_v43 = vmax.f32 %v1533_v3, 0.0 }
 0xa18   :  { %v1536_v40 = vpop.f32.mrf.mxu0 }
 0xa19   :  { %v1537_v41 = vadd.f32 %v1536_v40, %v1494_v38  ;;  %v1541_v42 = vmax.f32 %v1535_v39, 0.0 }
 0xa1b   :  { %v1542_v44 = vmax.f32 %v1537_v41, 0.0  ;;  %v1543_v48 = vpack.c.bf16 %v1541_v42, %v1539_v45 }
 0xa1d   :  { %v1544_v13 = vpack.c.bf16 %v1542_v44, %v1540_v43 }
 0xa1f   :  { %1712 = vmatprep.mubr.bf16.mxu1 %v1544_v13 }
 0xa20   :  { %1713 = vmatmul.mubr.bf16.vlgmr.msra.gmra.mxu1 %v1543_v48 }
 0xae0   :  { %v2017_v52 = vpop.f32.mrf.mxu1 }
 0xae2   :  { %v2018_v9 = vpop.f32.mrf.mxu1 }
 0xae3   :  { %v2019_v53 = vadd.f32 %v2018_v9, %v2017_v52 }
 0xae4   :  { %v2020_v55 = vpop.f32.mrf.mxu1 }
 0xae5   :  { %v1715_v57 = vadd.f32 %v2019_v53, %v1944_v54 }
 0xae6   :  { %v2021_v56 = vpop.f32.mrf.mxu1 }
 0xae7   :  { %v2022_v58 = vadd.f32 %v2021_v56, %v2020_v55  ;;  %v1721_v59 = vmax.f32 %v1715_v57, 0.0 }
 0xae9   :  { %v1718_v51 = vadd.f32 %v2022_v58, %v1944_v54 }
 0xaeb   :  { %v1722_v7 = vmax.f32 %v1718_v51, 0.0 }
 0xaed   :  { %v1723_v0 = vpack.c.bf16 %v1722_v7, %v1721_v59 }
 0xaef   :  { %2117 = vmatmul.mubr.bf16.vlgmr.msra.gmra.mxu0 %v1723_v0 }
 0xbaf   :  { %v1829_v60 = vpop.f32.mrf.mxu0 }
 0xbb0   :  { %v1830_v61 = vadd.f32 %v1961_v47, %v1829_v60 }
 0xbb1   :  { %v2118_v62 = vpop.f32.mrf.mxu0 }
 0xbb2   :  { %1836 = vst [vmem:[%s2729_s15] sm:$0xff] %v1830_v61 }
 0xbb3   :  { %v1832_v63 = vpop.f32.mrf.mxu0 }
 0xbb4   :  { %v1833_v1 = vadd.f32 %v1961_v47, %v1832_v63 }
 0xbb5   :  { %v2119_v2 = vpop.f32.mrf.mxu0 }
 0xbb6   :  { %1837 = vst [vmem:[%s2729_s15 + $0x8] sm:$0xff] %v1833_v1 }
 0xbb7   :  { %1842 = vsyncpa [#allocation3], 1 }

</bundles_post_ra>
